<compile_context>
chip_gen: v7x
topology: tpu7x:2x2x1
jax: 0.10.0
libtpu: 0.0.40
codegen_flags: <defaults>
</compile_context>

<pallas_src>
import functools

import jax
import jax.numpy as jnp
from jax.experimental import pallas as pl
from jax.experimental.pallas import tpu as pltpu

LANE = 128
VMEM_LIMIT_BYTES = 48 * 1024 * 1024   # explicit scoped-VMEM limit (v7x-safe)
VMEM_TILE_BUDGET = 40 * 1024 * 1024   # budget used when picking the batch tile


def _round_up(n, m):
    return ((n + m - 1) // m) * m


# ----------------------------------------------------------------------------
# Kernel
# ----------------------------------------------------------------------------
def vae_kernel(x_ref, eps_ref,
               ew1, eb1, ew2, eb2, whead, bhead,
               dw1, db1, dw2, db2, dw3, db3,
               xt_ref, z_ref, head_ref, *, lp):
    cdt = ew1.dtype  # compute (MXU input) dtype, e.g. bf16

    x = x_ref[...]

    # Encoder base: Linear -> ReLU -> Linear -> ReLU  (f32 accumulate)
    h = jnp.dot(x, ew1[...], preferred_element_type=jnp.float32) + eb1[...]
    h = jnp.maximum(h, 0.0).astype(cdt)
    h = jnp.dot(h, ew2[...], preferred_element_type=jnp.float32) + eb2[...]
    h = jnp.maximum(h, 0.0).astype(cdt)

    # Fused mu|logvar head: one MXU push, lane-dense (tb, 2*lp) output.
    head = jnp.dot(h, whead[...], preferred_element_type=jnp.float32) + bhead[...]
    mu = head[:, :lp]
    lv = head[:, lp:]

    # Reparameterization in f32 (exp on EUP; elementwise on VPU).
    std = jnp.exp(0.5 * lv)
    z = mu + eps_ref[...] * std

    # Decoder base: Linear -> ReLU -> Linear -> ReLU -> Linear
    d = jnp.dot(z.astype(cdt), dw1[...], preferred_element_type=jnp.float32) + db1[...]
    d = jnp.maximum(d, 0.0).astype(cdt)
    d = jnp.dot(d, dw2[...], preferred_element_type=jnp.float32) + db2[...]
    d = jnp.maximum(d, 0.0).astype(cdt)
    xt = jnp.dot(d, dw3[...], preferred_element_type=jnp.float32) + db3[...]

    xt_ref[...] = xt
    z_ref[...] = z
    head_ref[...] = head   # mu | logvar, split in the wrapper


# ----------------------------------------------------------------------------
# Parameter construction / padding
# ----------------------------------------------------------------------------
def make_params(key, data_dim, hidden_dim, latent_dim):
    """Xavier-uniform weights stored as (in, out); biases as (1, out) f32."""
    def linear(k, fan_in, fan_out):
        kw, _ = jax.random.split(k)
        limit = jnp.sqrt(6.0 / (fan_in + fan_out))
        w = jax.random.uniform(kw, (fan_in, fan_out), jnp.float32, -limit, limit)
        b = jnp.zeros((1, fan_out), jnp.float32)
        return w, b

    keys = jax.random.split(key, 8)
    ew1, eb1 = linear(keys[0], data_dim, hidden_dim)
    ew2, eb2 = linear(keys[1], hidden_dim, hidden_dim)
    wmu, bmu = linear(keys[2], hidden_dim, latent_dim)
    wlv, blv = linear(keys[3], hidden_dim, latent_dim)
    dw1, db1 = linear(keys[4], latent_dim, hidden_dim)
    dw2, db2 = linear(keys[5], hidden_dim, hidden_dim)
    dw3, db3 = linear(keys[6], hidden_dim, data_dim)
    # TODO(synk): C_eta (nn.Linear(1,1)) is initialized in the torch module but
    # never used in forward(); it is intentionally omitted here.
    return (ew1, eb1, ew2, eb2, wmu, bmu, wlv, blv,
            dw1, db1, dw2, db2, dw3, db3)


def pad_params(params, compute_dtype=jnp.bfloat16):
    """Zero-pad features to 128-lane multiples, fuse mu|logvar head, cast to bf16."""
    (ew1, eb1, ew2, eb2, wmu, bmu, wlv, blv,
     dw1, db1, dw2, db2, dw3, db3) = params
    data_dim, hidden_dim = ew1.shape
    latent_dim = wmu.shape[1]
    dp = _round_up(data_dim, LANE)
    hp = _round_up(hidden_dim, LANE)
    lp = _round_up(latent_dim, LANE)

    def pad_w(w, rp, cp):
        r, c = w.shape
        return jnp.pad(w, ((0, rp - r), (0, cp - c)))

    def pad_b(b, cp):
        return jnp.pad(b, ((0, 0), (0, cp - b.shape[1])))

    padded = {
        "ew1": pad_w(ew1, dp, hp).astype(compute_dtype), "eb1": pad_b(eb1, hp),
        "ew2": pad_w(ew2, hp, hp).astype(compute_dtype), "eb2": pad_b(eb2, hp),
        "whead": jnp.concatenate(
            [pad_w(wmu, hp, lp), pad_w(wlv, hp, lp)], axis=1).astype(compute_dtype),
        "bhead": jnp.concatenate([pad_b(bmu, lp), pad_b(blv, lp)], axis=1),
        "dw1": pad_w(dw1, lp, hp).astype(compute_dtype), "db1": pad_b(db1, hp),
        "dw2": pad_w(dw2, hp, hp).astype(compute_dtype), "db2": pad_b(db2, hp),
        "dw3": pad_w(dw3, hp, dp).astype(compute_dtype), "db3": pad_b(db3, dp),
    }
    dims = (data_dim, hidden_dim, latent_dim, dp, hp, lp)
    return padded, dims


_PARAM_ORDER = ("ew1", "eb1", "ew2", "eb2", "whead", "bhead",
                "dw1", "db1", "dw2", "db2", "dw3", "db3")


def _pick_batch_tile(dp, hp, lp, w_itemsize, budget_bytes):
    """Largest 16-aligned batch tile that keeps resident weights + streamed
    tiles + f32 intermediates under the VMEM budget (clamped to 512 rows)."""
    weight_bytes = (w_itemsize * (dp * hp + hp * hp + hp * 2 * lp
                                  + lp * hp + hp * hp + hp * dp)
                    + 4 * (hp + hp + 2 * lp + hp + hp + dp))
    per_row = (2 * (w_itemsize * dp + 4 * lp)        # double-buffered x, eps in
               + 2 * 4 * (dp + lp + 2 * lp)          # double-buffered f32 outputs
               + 4 * (2 * hp + 2 * lp + dp))         # live f32 intermediates
    avail = budget_bytes - 2 * weight_bytes
    if avail <= per_row * 16:
        return 16
    tb = (avail // per_row) // 16 * 16
    return int(max(16, min(512, tb)))


# ----------------------------------------------------------------------------
# Wrapper
# ----------------------------------------------------------------------------
@functools.partial(jax.jit, static_argnames=("dims", "batch_tile"))
def vae_forward(x, eps, padded, dims, batch_tile=None):
    data_dim, hidden_dim, latent_dim, dp, hp, lp = dims
    batch = x.shape[0]
    cdt = padded["ew1"].dtype

    if batch_tile is None:
        batch_tile = _pick_batch_tile(dp, hp, lp, jnp.dtype(cdt).itemsize,
                                      VMEM_TILE_BUDGET)
    tb = min(int(batch_tile), _round_up(batch, 16))
    bpad = _round_up(batch, tb)
    grid = (bpad // tb,)

    # Zero-pad activations once in the wrapper (lane-dense, 16-sublane tiles).
    x_p = jnp.zeros((bpad, dp), cdt).at[:batch, :data_dim].set(x.astype(cdt))
    eps_p = jnp.zeros((bpad, lp), jnp.float32).at[:batch, :latent_dim].set(
        eps.astype(jnp.float32))

    params = [padded[k] for k in _PARAM_ORDER]

    def act_spec(feat):
        return pl.BlockSpec((tb, feat), lambda i: (i, 0))

    def resident_spec(a):
        # Constant index map -> block never changes -> weights stay in VMEM.
        return pl.BlockSpec(a.shape, lambda i: (0, 0))

    flops = 2 * bpad * (dp * hp + hp * hp + hp * 2 * lp
                        + lp * hp + hp * hp + hp * dp)
    weight_bytes = sum(int(a.size) * a.dtype.itemsize for a in params)
    bytes_accessed = (int(x_p.size) * x_p.dtype.itemsize
                      + int(eps_p.size) * 4
                      + weight_bytes
                      + bpad * (dp + lp + 2 * lp) * 4)
    cost = pl.CostEstimate(flops=flops, transcendentals=bpad * lp,
                           bytes_accessed=bytes_accessed)

    out_shape = (
        jax.ShapeDtypeStruct((bpad, dp), jnp.float32),       # x_tilde (padded)
        jax.ShapeDtypeStruct((bpad, lp), jnp.float32),       # z       (padded)
        jax.ShapeDtypeStruct((bpad, 2 * lp), jnp.float32),   # mu | logvar
    )

    xt_p, z_p, head_p = pl.pallas_call(
        functools.partial(vae_kernel, lp=lp),
        out_shape=out_shape,
        grid=grid,
        in_specs=[act_spec(dp), act_spec(lp)] + [resident_spec(a) for a in params],
        out_specs=(act_spec(dp), act_spec(lp), act_spec(2 * lp)),
        compiler_params=pltpu.CompilerParams(
            dimension_semantics=("parallel",),
            vmem_limit_bytes=VMEM_LIMIT_BYTES),
        cost_estimate=cost,
    )(x_p, eps_p, *params)

    x_tilde = xt_p[:batch, :data_dim]
    z = z_p[:batch, :latent_dim]
    mu = head_p[:batch, :latent_dim]
    logvar = head_p[:batch, lp:lp + latent_dim]
    return x_tilde, z, mu, logvar


# ----------------------------------------------------------------------------
# Pure-JAX reference with matching bf16 rounding of MXU inputs
# ----------------------------------------------------------------------------
def reference(x, eps, params, compute_dtype):
    (ew1, eb1, ew2, eb2, wmu, bmu, wlv, blv,
     dw1, db1, dw2, db2, dw3, db3) = params
    q = lambda a: a.astype(compute_dtype).astype(jnp.float32)
    h = jnp.maximum(q(x) @ q(ew1) + eb1, 0.0)
    h = jnp.maximum(q(h) @ q(ew2) + eb2, 0.0)
    mu = q(h) @ q(wmu) + bmu
    lv = q(h) @ q(wlv) + blv
    z = mu + eps * jnp.exp(0.5 * lv)
    d = jnp.maximum(q(z) @ q(dw1) + db1, 0.0)
    d = jnp.maximum(q(d) @ q(dw2) + db2, 0.0)
    xt = q(d) @ q(dw3) + db3
    return xt, z, mu, lv


if __name__ == "__main__":
    # Small shapes consistent with the module's 'normal' forward path.
    batch = 8
    data_dim = 16
    hidden_dim = 32
    latent_dim = 8

    key = jax.random.PRNGKey(0)
    k_x, k_eps, k_params = jax.random.split(key, 3)

    x = jax.random.normal(k_x, (batch, data_dim), jnp.float32)
    # eps ~ N(0,1) for the reparameterization trick is drawn in plain JAX for
    # determinism (torch draws it inside forward via .normal_()).
    eps = jax.random.normal(k_eps, (batch, latent_dim), jnp.float32)

    params = make_params(k_params, data_dim, hidden_dim, latent_dim)
    padded, dims = pad_params(params, compute_dtype=jnp.bfloat16)

    outs = vae_forward(x, eps, padded, dims)
    jax.block_until_ready(outs)
    x_tilde, z, z_mu, z_logvar = outs

    rxt, rz, rmu, rlv = reference(x, eps, params, jnp.bfloat16)
    checks = ((x_tilde, rxt, "x_tilde"), (z, rz, "z"),
              (z_mu, rmu, "mu"), (z_logvar, rlv, "logvar"))
    for got, want, name in checks:
        assert got.shape == want.shape, f"{name} shape mismatch"
        assert jnp.allclose(got, want, rtol=2e-2, atol=2e-2), f"{name} mismatch"

    print("KERNEL_OK")
</pallas_src>

<mosaic_0001>
module attributes {stable_mosaic.version = 11 : i64} {
  func.func @vae_kernel(%arg0: i32, %arg1: memref<16x128xbf16, #tpu.memory_space<vmem>>, %arg2: memref<16x128xf32, #tpu.memory_space<vmem>>, %arg3: memref<128x128xbf16, #tpu.memory_space<vmem>>, %arg4: memref<1x128xf32, #tpu.memory_space<vmem>>, %arg5: memref<128x128xbf16, #tpu.memory_space<vmem>>, %arg6: memref<1x128xf32, #tpu.memory_space<vmem>>, %arg7: memref<128x256xbf16, #tpu.memory_space<vmem>>, %arg8: memref<1x256xf32, #tpu.memory_space<vmem>>, %arg9: memref<128x128xbf16, #tpu.memory_space<vmem>>, %arg10: memref<1x128xf32, #tpu.memory_space<vmem>>, %arg11: memref<128x128xbf16, #tpu.memory_space<vmem>>, %arg12: memref<1x128xf32, #tpu.memory_space<vmem>>, %arg13: memref<128x128xbf16, #tpu.memory_space<vmem>>, %arg14: memref<1x128xf32, #tpu.memory_space<vmem>>, %arg15: memref<16x128xf32, #tpu.memory_space<vmem>>, %arg16: memref<16x128xf32, #tpu.memory_space<vmem>>, %arg17: memref<16x256xf32, #tpu.memory_space<vmem>>) attributes {dimension_semantics = [#tpu.dimension_semantics<parallel>], iteration_bounds = array<i64: 1>, scalar_prefetch = 0 : i64, scratch_operands = 0 : i64, tpu.core_type = #tpu.core_type<tc>, window_params = [{transform_indices = @transform_0, window_bounds = array<i64: 16, 128>}, {transform_indices = @transform_1, window_bounds = array<i64: 16, 128>}, {pipeline_mode = #tpu.pipeline_mode<synchronous>, transform_indices = @transform_2, window_bounds = array<i64: 128, 128>}, {pipeline_mode = #tpu.pipeline_mode<synchronous>, transform_indices = @transform_3, window_bounds = array<i64: 1, 128>}, {pipeline_mode = #tpu.pipeline_mode<synchronous>, transform_indices = @transform_4, window_bounds = array<i64: 128, 128>}, {pipeline_mode = #tpu.pipeline_mode<synchronous>, transform_indices = @transform_5, window_bounds = array<i64: 1, 128>}, {pipeline_mode = #tpu.pipeline_mode<synchronous>, transform_indices = @transform_6, window_bounds = array<i64: 128, 256>}, {pipeline_mode = #tpu.pipeline_mode<synchronous>, transform_indices = @transform_7, window_bounds = array<i64: 1, 256>}, {pipeline_mode = #tpu.pipeline_mode<synchronous>, transform_indices = @transform_8, window_bounds = array<i64: 128, 128>}, {pipeline_mode = #tpu.pipeline_mode<synchronous>, transform_indices = @transform_9, window_bounds = array<i64: 1, 128>}, {pipeline_mode = #tpu.pipeline_mode<synchronous>, transform_indices = @transform_10, window_bounds = array<i64: 128, 128>}, {pipeline_mode = #tpu.pipeline_mode<synchronous>, transform_indices = @transform_11, window_bounds = array<i64: 1, 128>}, {pipeline_mode = #tpu.pipeline_mode<synchronous>, transform_indices = @transform_12, window_bounds = array<i64: 128, 128>}, {pipeline_mode = #tpu.pipeline_mode<synchronous>, transform_indices = @transform_13, window_bounds = array<i64: 1, 128>}, {transform_indices = @transform_14, window_bounds = array<i64: 16, 128>}, {transform_indices = @transform_15, window_bounds = array<i64: 16, 128>}, {transform_indices = @transform_16, window_bounds = array<i64: 16, 256>}]} {
    %c0 = arith.constant 0 : index
    %c0_0 = arith.constant 0 : index
    %0 = vector.load %arg1[%c0, %c0_0] : memref<16x128xbf16, #tpu.memory_space<vmem>>, vector<16x128xbf16>
    %c0_1 = arith.constant 0 : index
    %c0_2 = arith.constant 0 : index
    %1 = vector.load %arg3[%c0_1, %c0_2] : memref<128x128xbf16, #tpu.memory_space<vmem>>, vector<128x128xbf16>
    %cst = arith.constant dense<0.000000e+00> : vector<16x128xf32>
    %2 = tpu.matmul %0, %1, %cst {dimension_numbers = #tpu.dot_dimension_numbers<[1], [0], [0], [1], [0, 0, 1, 1], [], []>} : vector<16x128xbf16>, vector<128x128xbf16>, vector<16x128xf32> -> vector<16x128xf32>
    %c0_3 = arith.constant 0 : index
    %c0_4 = arith.constant 0 : index
    %3 = vector.load %arg4[%c0_3, %c0_4] : memref<1x128xf32, #tpu.memory_space<vmem>>, vector<1x128xf32>
    %4 = vector.broadcast %3 : vector<1x128xf32> to vector<16x128xf32>
    %5 = arith.addf %2, %4 : vector<16x128xf32>
    %cst_5 = arith.constant 0.000000e+00 : f32
    %6 = vector.broadcast %cst_5 : f32 to vector<16x128xf32>
    %7 = arith.maximumf %5, %6 : vector<16x128xf32>
    %8 = arith.truncf %7 : vector<16x128xf32> to vector<16x128xbf16>
    %c0_6 = arith.constant 0 : index
    %c0_7 = arith.constant 0 : index
    %9 = vector.load %arg5[%c0_6, %c0_7] : memref<128x128xbf16, #tpu.memory_space<vmem>>, vector<128x128xbf16>
    %cst_8 = arith.constant dense<0.000000e+00> : vector<16x128xf32>
    %10 = tpu.matmul %8, %9, %cst_8 {dimension_numbers = #tpu.dot_dimension_numbers<[1], [0], [0], [1], [0, 0, 1, 1], [], []>} : vector<16x128xbf16>, vector<128x128xbf16>, vector<16x128xf32> -> vector<16x128xf32>
    %c0_9 = arith.constant 0 : index
    %c0_10 = arith.constant 0 : index
    %11 = vector.load %arg6[%c0_9, %c0_10] : memref<1x128xf32, #tpu.memory_space<vmem>>, vector<1x128xf32>
    %12 = vector.broadcast %11 : vector<1x128xf32> to vector<16x128xf32>
    %13 = arith.addf %10, %12 : vector<16x128xf32>
    %cst_11 = arith.constant 0.000000e+00 : f32
    %14 = vector.broadcast %cst_11 : f32 to vector<16x128xf32>
    %15 = arith.maximumf %13, %14 : vector<16x128xf32>
    %16 = arith.truncf %15 : vector<16x128xf32> to vector<16x128xbf16>
    %c0_12 = arith.constant 0 : index
    %c0_13 = arith.constant 0 : index
    %17 = vector.load %arg7[%c0_12, %c0_13] : memref<128x256xbf16, #tpu.memory_space<vmem>>, vector<128x256xbf16>
    %cst_14 = arith.constant dense<0.000000e+00> : vector<16x256xf32>
    %18 = tpu.matmul %16, %17, %cst_14 {dimension_numbers = #tpu.dot_dimension_numbers<[1], [0], [0], [1], [0, 0, 1, 1], [], []>} : vector<16x128xbf16>, vector<128x256xbf16>, vector<16x256xf32> -> vector<16x256xf32>
    %c0_15 = arith.constant 0 : index
    %c0_16 = arith.constant 0 : index
    %19 = vector.load %arg8[%c0_15, %c0_16] : memref<1x256xf32, #tpu.memory_space<vmem>>, vector<1x256xf32>
    %20 = vector.broadcast %19 : vector<1x256xf32> to vector<16x256xf32>
    %21 = arith.addf %18, %20 : vector<16x256xf32>
    %22 = vector.extract_strided_slice %21 {offsets = [0, 0], sizes = [16, 128], strides = [1, 1]} : vector<16x256xf32> to vector<16x128xf32>
    %23 = vector.extract_strided_slice %21 {offsets = [0, 128], sizes = [16, 128], strides = [1, 1]} : vector<16x256xf32> to vector<16x128xf32>
    %cst_17 = arith.constant 5.000000e-01 : f32
    %24 = vector.broadcast %cst_17 : f32 to vector<16x128xf32>
    %25 = arith.mulf %24, %23 : vector<16x128xf32>
    %26 = math.exp %25 : vector<16x128xf32>
    %c0_18 = arith.constant 0 : index
    %c0_19 = arith.constant 0 : index
    %27 = vector.load %arg2[%c0_18, %c0_19] : memref<16x128xf32, #tpu.memory_space<vmem>>, vector<16x128xf32>
    %28 = arith.mulf %27, %26 : vector<16x128xf32>
    %29 = arith.addf %22, %28 : vector<16x128xf32>
    %30 = arith.truncf %29 : vector<16x128xf32> to vector<16x128xbf16>
    %c0_20 = arith.constant 0 : index
    %c0_21 = arith.constant 0 : index
    %31 = vector.load %arg9[%c0_20, %c0_21] : memref<128x128xbf16, #tpu.memory_space<vmem>>, vector<128x128xbf16>
    %cst_22 = arith.constant dense<0.000000e+00> : vector<16x128xf32>
    %32 = tpu.matmul %30, %31, %cst_22 {dimension_numbers = #tpu.dot_dimension_numbers<[1], [0], [0], [1], [0, 0, 1, 1], [], []>} : vector<16x128xbf16>, vector<128x128xbf16>, vector<16x128xf32> -> vector<16x128xf32>
    %c0_23 = arith.constant 0 : index
    %c0_24 = arith.constant 0 : index
    %33 = vector.load %arg10[%c0_23, %c0_24] : memref<1x128xf32, #tpu.memory_space<vmem>>, vector<1x128xf32>
    %34 = vector.broadcast %33 : vector<1x128xf32> to vector<16x128xf32>
    %35 = arith.addf %32, %34 : vector<16x128xf32>
    %cst_25 = arith.constant 0.000000e+00 : f32
    %36 = vector.broadcast %cst_25 : f32 to vector<16x128xf32>
    %37 = arith.maximumf %35, %36 : vector<16x128xf32>
    %38 = arith.truncf %37 : vector<16x128xf32> to vector<16x128xbf16>
    %c0_26 = arith.constant 0 : index
    %c0_27 = arith.constant 0 : index
    %39 = vector.load %arg11[%c0_26, %c0_27] : memref<128x128xbf16, #tpu.memory_space<vmem>>, vector<128x128xbf16>
    %cst_28 = arith.constant dense<0.000000e+00> : vector<16x128xf32>
    %40 = tpu.matmul %38, %39, %cst_28 {dimension_numbers = #tpu.dot_dimension_numbers<[1], [0], [0], [1], [0, 0, 1, 1], [], []>} : vector<16x128xbf16>, vector<128x128xbf16>, vector<16x128xf32> -> vector<16x128xf32>
    %c0_29 = arith.constant 0 : index
    %c0_30 = arith.constant 0 : index
    %41 = vector.load %arg12[%c0_29, %c0_30] : memref<1x128xf32, #tpu.memory_space<vmem>>, vector<1x128xf32>
    %42 = vector.broadcast %41 : vector<1x128xf32> to vector<16x128xf32>
    %43 = arith.addf %40, %42 : vector<16x128xf32>
    %cst_31 = arith.constant 0.000000e+00 : f32
    %44 = vector.broadcast %cst_31 : f32 to vector<16x128xf32>
    %45 = arith.maximumf %43, %44 : vector<16x128xf32>
    %46 = arith.truncf %45 : vector<16x128xf32> to vector<16x128xbf16>
    %c0_32 = arith.constant 0 : index
    %c0_33 = arith.constant 0 : index
    %47 = vector.load %arg13[%c0_32, %c0_33] : memref<128x128xbf16, #tpu.memory_space<vmem>>, vector<128x128xbf16>
    %cst_34 = arith.constant dense<0.000000e+00> : vector<16x128xf32>
    %48 = tpu.matmul %46, %47, %cst_34 {dimension_numbers = #tpu.dot_dimension_numbers<[1], [0], [0], [1], [0, 0, 1, 1], [], []>} : vector<16x128xbf16>, vector<128x128xbf16>, vector<16x128xf32> -> vector<16x128xf32>
    %c0_35 = arith.constant 0 : index
    %c0_36 = arith.constant 0 : index
    %49 = vector.load %arg14[%c0_35, %c0_36] : memref<1x128xf32, #tpu.memory_space<vmem>>, vector<1x128xf32>
    %50 = vector.broadcast %49 : vector<1x128xf32> to vector<16x128xf32>
    %51 = arith.addf %48, %50 : vector<16x128xf32>
    %c0_37 = arith.constant 0 : index
    %c0_38 = arith.constant 0 : index
    %52 = vector.load %arg15[%c0_37, %c0_38] : memref<16x128xf32, #tpu.memory_space<vmem>>, vector<16x128xf32>
    tpu.vector_store %arg15[%c0_37, %c0_38], %51 {strides = array<i32>} : memref<16x128xf32, #tpu.memory_space<vmem>>, vector<16x128xf32>,
    %c0_39 = arith.constant 0 : index
    %c0_40 = arith.constant 0 : index
    %53 = vector.load %arg16[%c0_39, %c0_40] : memref<16x128xf32, #tpu.memory_space<vmem>>, vector<16x128xf32>
    tpu.vector_store %arg16[%c0_39, %c0_40], %29 {strides = array<i32>} : memref<16x128xf32, #tpu.memory_space<vmem>>, vector<16x128xf32>,
    %c0_41 = arith.constant 0 : index
    %c0_42 = arith.constant 0 : index
    %54 = vector.load %arg17[%c0_41, %c0_42] : memref<16x256xf32, #tpu.memory_space<vmem>>, vector<16x256xf32>
    tpu.vector_store %arg17[%c0_41, %c0_42], %21 {strides = array<i32>} : memref<16x256xf32, #tpu.memory_space<vmem>>, vector<16x256xf32>,
    return
  }
  func.func @transform_0(%arg0: i32) -> (i32, i32) {
    %c0_i32 = arith.constant 0 : i32
    %c0_i32_0 = arith.constant 0 : i32
    return %arg0, %c0_i32 : i32, i32
  }
  func.func @transform_1(%arg0: i32) -> (i32, i32) {
    %c0_i32 = arith.constant 0 : i32
    %c0_i32_0 = arith.constant 0 : i32
    return %arg0, %c0_i32 : i32, i32
  }
  func.func @transform_2(%arg0: i32) -> (i32, i32) {
    %c0_i32 = arith.constant 0 : i32
    %c0_i32_0 = arith.constant 0 : i32
    %c0_i32_1 = arith.constant 0 : i32
    return %c0_i32, %c0_i32_0 : i32, i32
  }
  func.func @transform_3(%arg0: i32) -> (i32, i32) {
    %c0_i32 = arith.constant 0 : i32
    %c0_i32_0 = arith.constant 0 : i32
    %c0_i32_1 = arith.constant 0 : i32
    return %c0_i32, %c0_i32_0 : i32, i32
  }
  func.func @transform_4(%arg0: i32) -> (i32, i32) {
    %c0_i32 = arith.constant 0 : i32
    %c0_i32_0 = arith.constant 0 : i32
    %c0_i32_1 = arith.constant 0 : i32
    return %c0_i32, %c0_i32_0 : i32, i32
  }
  func.func @transform_5(%arg0: i32) -> (i32, i32) {
    %c0_i32 = arith.constant 0 : i32
    %c0_i32_0 = arith.constant 0 : i32
    %c0_i32_1 = arith.constant 0 : i32
    return %c0_i32, %c0_i32_0 : i32, i32
  }
  func.func @transform_6(%arg0: i32) -> (i32, i32) {
    %c0_i32 = arith.constant 0 : i32
    %c0_i32_0 = arith.constant 0 : i32
    %c0_i32_1 = arith.constant 0 : i32
    return %c0_i32, %c0_i32_0 : i32, i32
  }
  func.func @transform_7(%arg0: i32) -> (i32, i32) {
    %c0_i32 = arith.constant 0 : i32
    %c0_i32_0 = arith.constant 0 : i32
    %c0_i32_1 = arith.constant 0 : i32
    return %c0_i32, %c0_i32_0 : i32, i32
  }
  func.func @transform_8(%arg0: i32) -> (i32, i32) {
    %c0_i32 = arith.constant 0 : i32
    %c0_i32_0 = arith.constant 0 : i32
    %c0_i32_1 = arith.constant 0 : i32
    return %c0_i32, %c0_i32_0 : i32, i32
  }
  func.func @transform_9(%arg0: i32) -> (i32, i32) {
    %c0_i32 = arith.constant 0 : i32
    %c0_i32_0 = arith.constant 0 : i32
    %c0_i32_1 = arith.constant 0 : i32
    return %c0_i32, %c0_i32_0 : i32, i32
  }
  func.func @transform_10(%arg0: i32) -> (i32, i32) {
    %c0_i32 = arith.constant 0 : i32
    %c0_i32_0 = arith.constant 0 : i32
    %c0_i32_1 = arith.constant 0 : i32
    return %c0_i32, %c0_i32_0 : i32, i32
  }
  func.func @transform_11(%arg0: i32) -> (i32, i32) {
    %c0_i32 = arith.constant 0 : i32
    %c0_i32_0 = arith.constant 0 : i32
    %c0_i32_1 = arith.constant 0 : i32
    return %c0_i32, %c0_i32_0 : i32, i32
  }
  func.func @transform_12(%arg0: i32) -> (i32, i32) {
    %c0_i32 = arith.constant 0 : i32
    %c0_i32_0 = arith.constant 0 : i32
    %c0_i32_1 = arith.constant 0 : i32
    return %c0_i32, %c0_i32_0 : i32, i32
  }
  func.func @transform_13(%arg0: i32) -> (i32, i32) {
    %c0_i32 = arith.constant 0 : i32
    %c0_i32_0 = arith.constant 0 : i32
    %c0_i32_1 = arith.constant 0 : i32
    return %c0_i32, %c0_i32_0 : i32, i32
  }
  func.func @transform_14(%arg0: i32) -> (i32, i32) {
    %c0_i32 = arith.constant 0 : i32
    %c0_i32_0 = arith.constant 0 : i32
    return %arg0, %c0_i32 : i32, i32
  }
  func.func @transform_15(%arg0: i32) -> (i32, i32) {
    %c0_i32 = arith.constant 0 : i32
    %c0_i32_0 = arith.constant 0 : i32
    return %arg0, %c0_i32 : i32, i32
  }
  func.func @transform_16(%arg0: i32) -> (i32, i32) {
    %c0_i32 = arith.constant 0 : i32
    %c0_i32_0 = arith.constant 0 : i32
    return %arg0, %c0_i32 : i32, i32
  }
}

</mosaic_0001>

<bundles_post_ra>
// kernel: vae_forward.1
= control target key start
LH: loop header
LB: loop body
LE: loop exit
PB: predicated region body
PF: predicated region fallthrough
CT: control target
= control target key end

     0   :  { %s1584_s0 = inlined_call_operand.vmem [shape: bf16[16,128], index: 0, kind: input, shape index: {}]   ;;  %s1585_s1 = inlined_call_operand.vmem [shape: f32[16,128], index: 1, kind: input, shape index: {}]   ;;  %s1586_s2 = inlined_call_operand.vmem [shape: bf16[128,128], index: 2, kind: input, shape index: {}]   ;;  %s1587_s3 = inlined_call_operand.vmem [shape: f32[1,128], index: 3, kind: input, shape index: {}]   ;;  %s1588_s4 = inlined_call_operand.hbm [shape: bf16[128,128], index: 4, kind: input, shape index: {}]   ;;  %s1589_s5 = inlined_call_operand.vmem [shape: f32[1,128], index: 5, kind: input, shape index: {}]   ;;  %s1590_s6 = inlined_call_operand.hbm [shape: bf16[128,256], index: 6, kind: input, shape index: {}]   ;;  %s1591_s7 = inlined_call_operand.vmem [shape: f32[1,256], index: 7, kind: input, shape index: {}]   ;;  %s1592_s8 = inlined_call_operand.hbm [shape: bf16[128,128], index: 8, kind: input, shape index: {}]   ;;  %s1593_s9 = inlined_call_operand.vmem [shape: f32[1,128], index: 9, kind: input, shape index: {}]   ;;  %s1594_s10 = inlined_call_operand.hbm [shape: bf16[128,128], index: 10, kind: input, shape index: {}]   ;;  %s1595_s11 = inlined_call_operand.vmem [shape: f32[1,128], index: 11, kind: input, shape index: {}]   ;;  %s1596_s12 = inlined_call_operand.hbm [shape: bf16[128,128], index: 12, kind: input, shape index: {}]   ;;  %s1597_s13 = inlined_call_operand.vmem [shape: f32[1,128], index: 13, kind: input, shape index: {}]   ;;  %s1598_s14 = inlined_call_operand.vmem [shape: f32[16,128], index: 14, kind: output, shape index: {0}]   ;;  %s1599_s15 = inlined_call_operand.vmem [shape: f32[16,128], index: 15, kind: output, shape index: {1}]   ;;  %s1600_s16 = inlined_call_operand.vmem [shape: f32[16,256], index: 16, kind: output, shape index: {2}]  }
   0x1   :  { %1602 = sst [smem:[#allocation13_spill]] %s1584_s0 }
   0x2   :  { %1603 = sst [smem:[#allocation14_spill]] %s1598_s14 }
   0x3   :  { %22 = vsyncpa [#allocation3], 0 }
   0x4   :  { %23 = vsyncpa [#allocation5], 0 }
   0x5   :  { %24 = vsyncpa [#allocation8], 0  ;;  %s1290_s21 = smov [#allocation4]   ;;  %s1174_s25 = scalar_lea.hbm %s1590_s6, 2048 }
   0x6   :  { %s52_s22 = sshll.u32 %s1290_s21, 4  ;;  %p1175_p0 = scmp.ne.s32.totalorder %s1590_s6, %s1174_s25  ;;  %s53_s22 = int_to_ptr.vmem [resolvable:$true] %s52_s22 }
   0x7   :  { %p1178_p1 = scmp.lt.u32.totalorder %s1174_s25, %s1590_s6 }
   0x9   :  { %p1180_p2 = pnand %p1178_p1, %p1175_p0 }
   0xb   :  { %1183 = shalt.err (!%p1180_p2)
}
   0xc   :  { %s1184_s30 = scalar_lea.vmem %s53_s22, 2048  ;;  %p1189_p4 = scmp.lt.s32.totalorder %s53_s22, %s53_s22 }
   0xd   :  { %p1185_p3 = scmp.ne.s32.totalorder %s53_s22, %s1184_s30  ;;  %p1190_p5 = scmp.lt.s32.totalorder %s1184_s30, %s1184_s30 }
   0xf   :  { %p1191_p6 = por %p1190_p5, %p1189_p4 }
  0x11   :  { %p1192_p7 = pnand %p1191_p6, %p1185_p3 }
  0x13   :  { %1195 = shalt.err (!%p1192_p7)
}
  0x14   :  { %s1291_s0 = smov 128   ;;  %s1292_s17 = smov 8  }
  0x15   :  { %58 = dma.hbm_to_vmem [thread:$0]  %s1590_s6, 2048, %s53_s22, [#allocation5], %s1291_s0, %s1291_s0, %s1292_s17  }
  0x16   :  { %s1293_s20 = smov [#allocation7]   ;;  %s1294_s23 = smov [#allocation2]  }
  0x17   :  { %s80_s21 = sshll.u32 %s1293_s20, 4  ;;  %s38_s24 = sshll.u32 %s1294_s23, 4  ;;  %s81_s21 = int_to_ptr.vmem [resolvable:$true] %s80_s21  ;;  %s39_s24 = int_to_ptr.vmem [resolvable:$true] %s38_s24 }
  0x18   :  { %s1196_s27 = scalar_lea.hbm %s1594_s10, 1024 }
  0x19   :  { %p1197_p8 = scmp.ne.s32.totalorder %s1594_s10, %s1196_s27  ;;  %p1200_p9 = scmp.lt.u32.totalorder %s1196_s27, %s1594_s10 }
  0x1b   :  { %p1202_p10 = pnand %p1200_p9, %p1197_p8 }
  0x1d   :  { %1205 = shalt.err (!%p1202_p10)
}
  0x1e   :  { %s1206_s6 = scalar_lea.vmem %s81_s21, 1024  ;;  %p1211_p12 = scmp.lt.s32.totalorder %s81_s21, %s81_s21 }
  0x1f   :  { %p1207_p11 = scmp.ne.s32.totalorder %s81_s21, %s1206_s6  ;;  %p1212_p13 = scmp.lt.s32.totalorder %s1206_s6, %s1206_s6 }
  0x21   :  { %p1213_p0 = por %p1212_p13, %p1211_p12 }
  0x23   :  { %p1214_p1 = pnand %p1213_p0, %p1207_p11 }
  0x25   :  { %1217 = shalt.err (!%p1214_p1)
}
  0x26   :  { %s1295_s22 = smov 64   ;;  %s1296_s0 = smov 4  }
  0x27   :  { %86 = dma.hbm_to_vmem [thread:$0]  %s1594_s10, 1024, %s81_s21, [#allocation8], %s1295_s22, %s1295_s22, %s1296_s0  }
  0x28   :  { %s1218_s20 = scalar_lea.hbm %s1588_s4, 1024 }
  0x29   :  { %p1219_p2 = scmp.ne.s32.totalorder %s1588_s4, %s1218_s20  ;;  %p1222_p3 = scmp.lt.u32.totalorder %s1218_s20, %s1588_s4 }
  0x2b   :  { %p1224_p4 = pnand %p1222_p3, %p1219_p2 }
  0x2d   :  { %1227 = shalt.err (!%p1224_p4)
}
  0x2e   :  { %s1228_s28 = scalar_lea.vmem %s39_s24, 1024  ;;  %p1233_p6 = scmp.lt.s32.totalorder %s39_s24, %s39_s24 }
  0x2f   :  { %p1229_p5 = scmp.ne.s32.totalorder %s39_s24, %s1228_s28  ;;  %p1234_p7 = scmp.lt.s32.totalorder %s1228_s28, %s1228_s28 }
  0x31   :  { %p1235_p8 = por %p1234_p7, %p1233_p6 }
  0x33   :  { %p1236_p9 = pnand %p1235_p8, %p1229_p5 }
  0x35   :  { %1239 = shalt.err (!%p1236_p9)
}
  0x36   :  { %44 = dma.hbm_to_vmem [thread:$0]  %s1588_s4, 1024, %s39_s24, [#allocation3], %s1295_s22, %s1295_s22, %s1296_s0  }
  0x37   :  { %s1297_s29 = smov [#allocation6]   ;;  %s1298_s6 = smov [#allocation9]  }
  0x38   :  { %s66_s30 = sshll.u32 %s1297_s29, 4  ;;  %s94_s17 = sshll.u32 %s1298_s6, 4  ;;  %s67_s30 = int_to_ptr.vmem [resolvable:$true] %s66_s30  ;;  %s95_s17 = int_to_ptr.vmem [resolvable:$true] %s94_s17 }
  0x39   :  { %s1240_s19 = scalar_lea.hbm %s1592_s8, 1024 }
  0x3a   :  { %p1241_p10 = scmp.ne.s32.totalorder %s1592_s8, %s1240_s19  ;;  %p1244_p11 = scmp.lt.u32.totalorder %s1240_s19, %s1592_s8 }
  0x3c   :  { %p1246_p12 = pnand %p1244_p11, %p1241_p10 }
  0x3e   :  { %1249 = shalt.err (!%p1246_p12)
}
  0x3f   :  { %s1250_s4 = scalar_lea.vmem %s67_s30, 1024  ;;  %p1255_p0 = scmp.lt.s32.totalorder %s67_s30, %s67_s30 }
  0x40   :  { %p1251_p13 = scmp.ne.s32.totalorder %s67_s30, %s1250_s4  ;;  %p1256_p1 = scmp.lt.s32.totalorder %s1250_s4, %s1250_s4 }
  0x42   :  { %p1257_p2 = por %p1256_p1, %p1255_p0 }
  0x44   :  { %p1258_p3 = pnand %p1257_p2, %p1251_p13 }
  0x46   :  { %1261 = shalt.err (!%p1258_p3)
}
  0x47   :  { %72 = dma.hbm_to_vmem [thread:$0]  %s1592_s8, 1024, %s67_s30, [#allocation5], %s1295_s22, %s1295_s22, %s1296_s0  }
  0x48   :  { %s1262_s21 = scalar_lea.hbm %s1596_s12, 1024 }
  0x49   :  { %p1263_p4 = scmp.ne.s32.totalorder %s1596_s12, %s1262_s21  ;;  %p1266_p5 = scmp.lt.u32.totalorder %s1262_s21, %s1596_s12 }
  0x4b   :  { %p1268_p6 = pnand %p1266_p5, %p1263_p4 }
  0x4d   :  { %1271 = shalt.err (!%p1268_p6)
}
  0x4e   :  { %s1272_s19 = scalar_lea.vmem %s95_s17, 1024  ;;  %p1277_p8 = scmp.lt.s32.totalorder %s95_s17, %s95_s17 }
  0x4f   :  { %p1273_p7 = scmp.ne.s32.totalorder %s95_s17, %s1272_s19  ;;  %p1278_p9 = scmp.lt.s32.totalorder %s1272_s19, %s1272_s19 }
  0x51   :  { %p1279_p10 = por %p1278_p9, %p1277_p8 }
  0x53   :  { %p1280_p11 = pnand %p1279_p10, %p1273_p7 }
  0x55   :  { %1283 = shalt.err (!%p1280_p11)
}
  0x56   :  { %100 = dma.hbm_to_vmem [thread:$0]  %s1596_s12, 1024, %s95_s17, [#allocation8], %s1295_s22, %s1295_s22, %s1296_s0  }
  0x57   :  { %1284 = dma.done.wait [#allocation3], 1024  }
  0x58   :  { %1285 = vsyncadd [#allocation3], 4294966272 }
  0x59   :  { %1286 = dma.done.wait [#allocation5], 3072  }
  0x5a   :  { %1287 = vsyncadd [#allocation5], 4294964224 }
  0x5b   :  { %1288 = dma.done.wait [#allocation8], 2048  }
  0x5c   :  { %1289 = vsyncadd [#allocation8], 4294965248  ;;  %v1299_v0 = vmov 0.0   ;;  %vm1300_vm0 = vmmov 0   ;;  %v1105_v1 = vld [vmem:[%s1586_s2] sm:$0xff]   ;;  %v1106_v2 = vld [vmem:[%s1586_s2 + $0x8] sm:$0xff]  }
  0x5d   :  { %993 = vmatprep.subr.bf16.mxu0 %v1299_v0  ;;  %1009 = vmatprep.mubr.msk.bf16.mxu0 %vm1300_vm0, %v1299_v0  ;;  %v1107_v3 = vld [vmem:[%s1586_s2 + $0x10] sm:$0xff]   ;;  %v1114_v4 = vld [vmem:[#allocation2] sm:$0xff]   ;;  %v1108_v5 = vld [vmem:[%s1586_s2 + $0x18] sm:$0xff]   ;;  %s1604_s19 = sld [smem:[#allocation13_spill]]  ;;  %v1301_v44 = vmov 0  }
  0x5e   :  { %1013 = vmatprep.subr.bf16.mxu1 %v1299_v0  ;;  %1029 = vmatprep.mubr.msk.bf16.mxu1 %vm1300_vm0, %v1299_v0  ;;  %v1115_v6 = vld [vmem:[#allocation2 + $0x8] sm:$0xff]   ;;  %v1109_v7 = vld [vmem:[%s1586_s2 + $0x20] sm:$0xff]   ;;  %v1116_v8 = vld [vmem:[#allocation2 + $0x10] sm:$0xff]  }
  0x5f   :  { %994 = vmatpush3.bf16.msra.mxu0 %v1105_v1  ;;  %1014 = vmatpush3.bf16.msra.mxu1 %v1114_v4  ;;  %v1110_v9 = vld [vmem:[%s1586_s2 + $0x28] sm:$0xff]   ;;  %v1117_v10 = vld [vmem:[#allocation2 + $0x18] sm:$0xff]   ;;  %v1111_v11 = vld [vmem:[%s1586_s2 + $0x30] sm:$0xff]  }
  0x60   :  { %995 = vmatprep.subr.bf16.mxu0 %v1299_v0  ;;  %1015 = vmatprep.subr.bf16.mxu1 %v1299_v0  ;;  %v1118_v12 = vld [vmem:[#allocation2 + $0x20] sm:$0xff]   ;;  %v1112_v13 = vld [vmem:[%s1586_s2 + $0x38] sm:$0xff]   ;;  %v1119_v14 = vld [vmem:[#allocation2 + $0x28] sm:$0xff]   ;;  %s1605_s2 = sld [smem:[#allocation14_spill]] }
  0x61   :  { %v1120_v16 = vld [vmem:[#allocation2 + $0x30] sm:$0xff]   ;;  %v1121_v17 = vld [vmem:[#allocation2 + $0x38] sm:$0xff]   ;;  %v1122_v18 = vld [vmem:[#allocation4] ss:$8 sps:$4 sm:$0xff]  }
  0x62   :  { %v1124_v19 = vld [vmem:[#allocation4 + $0x4] ss:$8 sps:$4 sm:$0xff]   ;;  %v1127_v20 = vld [vmem:[#allocation4 + $0x14] ss:$8 sps:$4 sm:$0xff]   ;;  %v1125_v21 = vld [vmem:[#allocation4 + $0x10] ss:$8 sps:$4 sm:$0xff]  }
  0x63   :  { %996 = vmatpush3.bf16.msra.mxu0 %v1106_v2  ;;  %1016 = vmatpush3.bf16.msra.mxu1 %v1115_v6  ;;  %v1113_v15 = vld [vmem:[%s1604_s19] sm:$0xff]   ;;  %v1133_v24 = vld [vmem:[#allocation4 + $0x34] ss:$8 sps:$4 sm:$0xff]   ;;  %v1131_v25 = vld [vmem:[#allocation4 + $0x30] ss:$8 sps:$4 sm:$0xff]   ;;  %v375_v6 = vlaneseq }
  0x64   :  { %997 = vmatprep.subr.bf16.mxu0 %v1299_v0  ;;  %1017 = vmatprep.subr.bf16.mxu1 %v1299_v0  ;;  %v1130_v22 = vld [vmem:[#allocation4 + $0x24] ss:$8 sps:$4 sm:$0xff]   ;;  %v1128_v23 = vld [vmem:[#allocation4 + $0x20] ss:$8 sps:$4 sm:$0xff]   ;;  %v1139_v28 = vld [vmem:[#allocation4 + $0x54] ss:$8 sps:$4 sm:$0xff]  }
  0x65   :  { %v1136_v26 = vld [vmem:[#allocation4 + $0x44] ss:$8 sps:$4 sm:$0xff]   ;;  %v1134_v27 = vld [vmem:[#allocation4 + $0x40] ss:$8 sps:$4 sm:$0xff]   ;;  %v1137_v29 = vld [vmem:[#allocation4 + $0x50] ss:$8 sps:$4 sm:$0xff]  }
  0x66   :  { %v886_v30 = vld [vmem:[%s1587_s3] ss:$0 sm:$0xff]  ;;  %v1142_v40 = vld [vmem:[#allocation4 + $0x64] ss:$8 sps:$4 sm:$0xff]   ;;  %v1145_v42 = vld [vmem:[#allocation4 + $0x74] ss:$8 sps:$4 sm:$0xff]  }
  0x67   :  { %998 = vmatpush3.bf16.msra.mxu0 %v1107_v3  ;;  %1018 = vmatpush3.bf16.msra.mxu1 %v1116_v8  ;;  %v1140_v41 = vld [vmem:[#allocation4 + $0x60] ss:$8 sps:$4 sm:$0xff]   ;;  %v1143_v43 = vld [vmem:[#allocation4 + $0x70] ss:$8 sps:$4 sm:$0xff]  }
  0x68   :  { %999 = vmatprep.subr.bf16.mxu0 %v1299_v0  ;;  %1019 = vmatprep.subr.bf16.mxu1 %v1299_v0  ;;  %v1146_v45 = vld [vmem:[#allocation6] sm:$0xff]   ;;  %v1147_v56 = vld [vmem:[#allocation6 + $0x8] sm:$0xff]   ;;  %v1148_v57 = vld [vmem:[#allocation6 + $0x10] sm:$0xff]  }
  0x69   :  { %v896_v46 = vld [vmem:[%s1589_s5] ss:$0 sm:$0xff]  ;;  %v1149_v58 = vld [vmem:[#allocation6 + $0x18] sm:$0xff]   ;;  %v1151_v60 = vld [vmem:[#allocation6 + $0x28] sm:$0xff]  }
  0x6a   :  { %v1150_v59 = vld [vmem:[#allocation6 + $0x20] sm:$0xff]   ;;  %v1152_v61 = vld [vmem:[#allocation6 + $0x30] sm:$0xff]   ;;  %v1153_v62 = vld [vmem:[#allocation6 + $0x38] sm:$0xff]  }
  0x6b   :  { %1000 = vmatpush3.bf16.msra.mxu0 %v1108_v5  ;;  %1020 = vmatpush3.bf16.msra.mxu1 %v1117_v10  ;;  %v1154_v63 = vld [vmem:[#allocation7] sm:$0xff]   ;;  %v1155_v1 = vld [vmem:[#allocation7 + $0x8] sm:$0xff]   ;;  %v1156_v2 = vld [vmem:[#allocation7 + $0x10] sm:$0xff]  }
  0x6c   :  { %1001 = vmatprep.subr.bf16.mxu0 %v1299_v0  ;;  %1021 = vmatprep.subr.bf16.mxu1 %v1299_v0  ;;  %v1157_v3 = vld [vmem:[#allocation7 + $0x18] sm:$0xff]   ;;  %v1158_v4 = vld [vmem:[#allocation7 + $0x20] sm:$0xff]   ;;  %v1159_v5 = vld [vmem:[#allocation7 + $0x28] sm:$0xff]  }
  0x6f   :  { %1002 = vmatpush3.bf16.msra.mxu0 %v1109_v7  ;;  %1022 = vmatpush3.bf16.msra.mxu1 %v1118_v12  ;;  %v376_v7 = vshrl.u32 %v375_v6, 7 }
  0x70   :  { %1003 = vmatprep.subr.bf16.mxu0 %v1299_v0  ;;  %1023 = vmatprep.subr.bf16.mxu1 %v1299_v0 }
  0x71   :  { %v377_v8 = vsub.s32 0, %v376_v7  ;;  %v381_v10 = vsub.s32 1, %v376_v7 }
  0x73   :  { %1004 = vmatpush3.bf16.msra.mxu0 %v1110_v9  ;;  %1024 = vmatpush3.bf16.msra.mxu1 %v1119_v14  ;;  %v373_v9 = vld [vmem:[%s1591_s7] sm:$0x3] }
  0x74   :  { %1005 = vmatprep.subr.bf16.mxu0 %v1299_v0  ;;  %1025 = vmatprep.subr.bf16.mxu1 %v1299_v0  ;;  %v382_v12 = vrot.slane %v373_v9, %v381_v10 }
  0x77   :  { %1006 = vmatpush3.bf16.msra.mxu0 %v1111_v11  ;;  %1026 = vmatpush3.bf16.msra.mxu1 %v1120_v16  ;;  %v378_v11 = vrot.slane %v373_v9, %v377_v8 }
  0x78   :  { %1007 = vmatprep.subr.bf16.mxu0 %v1299_v0  ;;  %1027 = vmatprep.subr.bf16.mxu1 %v1299_v0 }
  0x7b   :  { %1008 = vmatpush3.bf16.msra.mxu0 %v1112_v13  ;;  %1028 = vmatpush3.bf16.msra.mxu1 %v1121_v17 }
  0x7c   :  { %1033 = vmatprep.subr.bf16.mxu1 %v1299_v0  ;;  %465 = vmatprep.subr.bf16.mxu0 %v1124_v19 }
  0x7e   :  { %1010 = vmatmul.mubr.bf16.vlgmr.msra.gmra.mrb[0].mxu0 %v1113_v15 }
  0x7f   :  { %466 = vmatpush1.bf16.msra.mxu0 %v1122_v18  ;;  %497 = vmatprep.mubr.bf16.mxu0 %v1301_v44 }
  0x80   :  { %467 = vmatprep.subr.bf16.mxu0 %v1127_v20 }
  0x83   :  { %468 = vmatpush1.bf16.msra.mxu0 %v1125_v21 }
  0x84   :  { %469 = vmatprep.subr.bf16.mxu0 %v1130_v22 }
  0x87   :  { %470 = vmatpush1.bf16.msra.mxu0 %v1128_v23 }
  0x88   :  { %471 = vmatprep.subr.bf16.mxu0 %v1133_v24 }
  0x8b   :  { %472 = vmatpush1.bf16.msra.mxu0 %v1131_v25  ;;  %v514_v25 = vld [vmem:[%s1585_s1] sm:$0xff] }
  0x8c   :  { %473 = vmatprep.subr.bf16.mxu0 %v1136_v26 }
  0x8f   :  { %474 = vmatpush1.bf16.msra.mxu0 %v1134_v27  ;;  %v515_v27 = vld [vmem:[%s1585_s1 + $0x8] sm:$0xff] }
  0x90   :  { %475 = vmatprep.subr.bf16.mxu0 %v1139_v28 }
  0x93   :  { %476 = vmatpush1.bf16.msra.mxu0 %v1137_v29 }
  0x94   :  { %477 = vmatprep.subr.bf16.mxu0 %v1142_v40  ;;  %v1166_v40 = vld [vmem:[#allocation9 + $0x20] sm:$0xff]  }
  0x97   :  { %478 = vmatpush1.bf16.msra.mxu0 %v1140_v41  ;;  %v1167_v41 = vld [vmem:[#allocation9 + $0x28] sm:$0xff]  }
  0x98   :  { %479 = vmatprep.subr.bf16.mxu0 %v1145_v42  ;;  %v921_v42 = vld [vmem:[%s1593_s9] ss:$0 sm:$0xff] }
  0x9b   :  { %480 = vmatpush1.bf16.msra.mxu0 %v1143_v43 }
  0x9c   :  { %1053 = vmatprep.subr.bf16.mxu0 %v1299_v0 }
 0x151   :  { %v232_v31 = vpop.f32.mrb[0].mxu0 }
 0x152   :  { %v233_v32 = vadd.f32 %v886_v30, %v232_v31  ;;  %v1011_v33 = vpop.f32.mrb[1].mxu0 }
 0x153   :  { %v235_v34 = vpop.f32.mrb[2].mxu0 }
 0x154   :  { %v236_v35 = vadd.f32 %v886_v30, %v235_v34  ;;  %v1012_v36 = vpop.f32.mrb[3].mxu0  ;;  %v239_v37 = vmax.f32 %v233_v32, 0.0  ;;  %v1160_v34 = vld [vmem:[#allocation7 + $0x30] sm:$0xff]  }
 0x155   :  { %v1162_v36 = vld [vmem:[#allocation9] sm:$0xff]  }
 0x156   :  { %v240_v38 = vmax.f32 %v236_v35, 0.0  ;;  %v1161_v35 = vld [vmem:[#allocation7 + $0x38] sm:$0xff]  }
 0x158   :  { %v241_v39 = vpack.c.bf16 %v240_v38, %v239_v37  ;;  %v1163_v37 = vld [vmem:[#allocation9 + $0x8] sm:$0xff]   ;;  %v1164_v38 = vld [vmem:[#allocation9 + $0x10] sm:$0xff]  }
 0x15a   :  { %1030 = vmatmul.mubr.bf16.vlgmr.msra.gmra.mrb[0].mxu1 %v241_v39  ;;  %v1165_v39 = vld [vmem:[#allocation9 + $0x18] sm:$0xff]  }
 0x15b   :  { %1049 = vmatprep.mubr.msk.bf16.mxu1 %vm1300_vm0, %v1299_v0  ;;  %1034 = vmatpush3.bf16.msra.mxu1 %v1146_v45 }
 0x15c   :  { %1035 = vmatprep.subr.bf16.mxu1 %v1299_v0 }
 0x15f   :  { %1036 = vmatpush3.bf16.msra.mxu1 %v1147_v56 }
 0x160   :  { %1037 = vmatprep.subr.bf16.mxu1 %v1299_v0 }
 0x163   :  { %1038 = vmatpush3.bf16.msra.mxu1 %v1148_v57 }
 0x164   :  { %1039 = vmatprep.subr.bf16.mxu1 %v1299_v0 }
 0x167   :  { %1040 = vmatpush3.bf16.msra.mxu1 %v1149_v58 }
 0x168   :  { %1041 = vmatprep.subr.bf16.mxu1 %v1299_v0 }
 0x16b   :  { %1042 = vmatpush3.bf16.msra.mxu1 %v1150_v59 }
 0x16c   :  { %1043 = vmatprep.subr.bf16.mxu1 %v1299_v0 }
 0x16f   :  { %1044 = vmatpush3.bf16.msra.mxu1 %v1151_v60 }
 0x170   :  { %1045 = vmatprep.subr.bf16.mxu1 %v1299_v0 }
 0x173   :  { %1046 = vmatpush3.bf16.msra.mxu1 %v1152_v61 }
 0x174   :  { %1047 = vmatprep.subr.bf16.mxu1 %v1299_v0 }
 0x177   :  { %1048 = vmatpush3.bf16.msra.mxu1 %v1153_v62 }
 0x178   :  { %1073 = vmatprep.subr.bf16.mxu1 %v1299_v0 }
 0x22d   :  { %v347_v47 = vpop.f32.mrb[0].mxu1 }
 0x22e   :  { %v348_v48 = vadd.f32 %v896_v46, %v347_v47  ;;  %v1031_v49 = vpop.f32.mrb[1].mxu1 }
 0x22f   :  { %v350_v50 = vpop.f32.mrb[2].mxu1 }
 0x230   :  { %v351_v51 = vadd.f32 %v896_v46, %v350_v50  ;;  %v1032_v52 = vpop.f32.mrb[3].mxu1  ;;  %v354_v53 = vmax.f32 %v348_v48, 0.0 }
 0x231   :  { %v1168_v52 = vld [vmem:[#allocation9 + $0x30] sm:$0xff]  }
 0x232   :  { %v355_v54 = vmax.f32 %v351_v51, 0.0 }
 0x234   :  { %v356_v55 = vpack.c.bf16 %v355_v54, %v354_v53  ;;  %v1169_v53 = vld [vmem:[#allocation9 + $0x38] sm:$0xff]   ;;  %v930_v54 = vld [vmem:[%s1595_s11] ss:$0 sm:$0xff] }
 0x236   :  { %498 = vmatmul.mubr.bf16.vlgmr.msra.gmra.mrb[4].mxu0 %v356_v55 }
 0x237   :  { %1069 = vmatprep.mubr.msk.bf16.mxu0 %vm1300_vm0, %v1299_v0  ;;  %1054 = vmatpush3.bf16.msra.mxu0 %v1154_v63 }
 0x238   :  { %1055 = vmatprep.subr.bf16.mxu0 %v1299_v0 }
 0x23b   :  { %1056 = vmatpush3.bf16.msra.mxu0 %v1155_v1 }
 0x23c   :  { %1057 = vmatprep.subr.bf16.mxu0 %v1299_v0 }
 0x23f   :  { %1058 = vmatpush3.bf16.msra.mxu0 %v1156_v2 }
 0x240   :  { %1059 = vmatprep.subr.bf16.mxu0 %v1299_v0 }
 0x243   :  { %1060 = vmatpush3.bf16.msra.mxu0 %v1157_v3 }
 0x244   :  { %1061 = vmatprep.subr.bf16.mxu0 %v1299_v0 }
 0x247   :  { %1062 = vmatpush3.bf16.msra.mxu0 %v1158_v4 }
 0x248   :  { %1063 = vmatprep.subr.bf16.mxu0 %v1299_v0 }
 0x24b   :  { %1064 = vmatpush3.bf16.msra.mxu0 %v1159_v5 }
 0x24c   :  { %1065 = vmatprep.subr.bf16.mxu0 %v1299_v0 }
 0x24f   :  { %1066 = vmatpush3.bf16.msra.mxu0 %v1160_v34 }
 0x250   :  { %1067 = vmatprep.subr.bf16.mxu0 %v1299_v0 }
 0x253   :  { %1068 = vmatpush3.bf16.msra.mxu0 %v1161_v35 }
 0x309   :  { %v499_v13 = vpop.f32.mrb[4].mxu0 }
 0x30a   :  { %v500_v14 = vadd.f32 %v499_v13, %v378_v11  ;;  %v501_v15 = vpop.f32.mrb[5].mxu0 }
 0x30b   :  { %v502_v16 = vadd.f32 %v501_v15, %v382_v12  ;;  %v503_v17 = vpop.f32.mrb[6].mxu0 }
 0x30c   :  { %867 = vst [vmem:[%s1600_s16] sm:$0xff] %v500_v14  ;;  %v504_v18 = vadd.f32 %v503_v17, %v378_v11  ;;  %v505_v19 = vpop.f32.mrb[7].mxu0 }
 0x30d   :  { %v508_v20 = vmul.f32 0.5, %v502_v16  ;;  %868 = vst [vmem:[%s1600_s16 + $0x8] sm:$0xff] %v502_v16  ;;  %v506_v21 = vadd.f32 %v505_v19, %v382_v12 }
 0x30e   :  { %869 = vst [vmem:[%s1600_s16 + $0x10] sm:$0xff] %v504_v18 }
 0x30f   :  { %v510_v22 = vmul.f32 1.442695, %v508_v20  ;;  %v509_v23 = vmul.f32 0.5, %v506_v21  ;;  %870 = vst [vmem:[%s1600_s16 + $0x18] sm:$0xff] %v506_v21 }
 0x311   :  { %1170 = vpow2.f32 %v510_v22  ;;  %v512_v24 = vmul.f32 1.442695, %v509_v23 }
 0x313   :  { %1172 = vpow2.f32 %v512_v24 }
 0x31b   :  { %v1171_v26 = vpop.eup %1170 }
 0x31c   :  { %v516_v28 = vmul.f32 %v1171_v26, %v514_v25 }
 0x31d   :  { %v1173_v29 = vpop.eup %1172 }
 0x31e   :  { %v517_v30 = vmul.f32 %v1173_v29, %v515_v27  ;;  %v518_v31 = vadd.f32 %v516_v28, %v500_v14 }
 0x320   :  { %v519_v32 = vadd.f32 %v517_v30, %v504_v18  ;;  %865 = vst [vmem:[%s1599_s15] sm:$0xff] %v518_v31 }
 0x322   :  { %v520_v33 = vpack.c.bf16 %v519_v32, %v518_v31  ;;  %866 = vst [vmem:[%s1599_s15 + $0x8] sm:$0xff] %v519_v32 }
 0x324   :  { %1050 = vmatmul.mubr.bf16.vlgmr.msra.gmra.mrb[4].mxu1 %v520_v33 }
 0x325   :  { %1089 = vmatprep.mubr.msk.bf16.mxu1 %vm1300_vm0, %v1299_v0  ;;  %1074 = vmatpush3.bf16.msra.mxu1 %v1162_v36 }
 0x326   :  { %1075 = vmatprep.subr.bf16.mxu1 %v1299_v0 }
 0x329   :  { %1076 = vmatpush3.bf16.msra.mxu1 %v1163_v37 }
 0x32a   :  { %1077 = vmatprep.subr.bf16.mxu1 %v1299_v0 }
 0x32d   :  { %1078 = vmatpush3.bf16.msra.mxu1 %v1164_v38 }
 0x32e   :  { %1079 = vmatprep.subr.bf16.mxu1 %v1299_v0 }
 0x331   :  { %1080 = vmatpush3.bf16.msra.mxu1 %v1165_v39 }
 0x332   :  { %1081 = vmatprep.subr.bf16.mxu1 %v1299_v0 }
 0x335   :  { %1082 = vmatpush3.bf16.msra.mxu1 %v1166_v40 }
 0x336   :  { %1083 = vmatprep.subr.bf16.mxu1 %v1299_v0 }
 0x339   :  { %1084 = vmatpush3.bf16.msra.mxu1 %v1167_v41 }
 0x33a   :  { %1085 = vmatprep.subr.bf16.mxu1 %v1299_v0 }
 0x33d   :  { %1086 = vmatpush3.bf16.msra.mxu1 %v1168_v52 }
 0x33e   :  { %1087 = vmatprep.subr.bf16.mxu1 %v1299_v0  ;;  %v939_v0 = vld [vmem:[%s1597_s13] ss:$0 sm:$0xff] }
 0x341   :  { %1088 = vmatpush3.bf16.msra.mxu1 %v1169_v53 }
 0x3f7   :  { %v626_v43 = vpop.f32.mrb[4].mxu1 }
 0x3f8   :  { %v627_v44 = vadd.f32 %v921_v42, %v626_v43  ;;  %v1051_v45 = vpop.f32.mrb[5].mxu1 }
 0x3f9   :  { %v629_v46 = vpop.f32.mrb[6].mxu1 }
 0x3fa   :  { %v630_v47 = vadd.f32 %v921_v42, %v629_v46  ;;  %v1052_v48 = vpop.f32.mrb[7].mxu1  ;;  %v633_v49 = vmax.f32 %v627_v44, 0.0 }
 0x3fc   :  { %v634_v50 = vmax.f32 %v630_v47, 0.0 }
 0x3fe   :  { %v635_v51 = vpack.c.bf16 %v634_v50, %v633_v49 }
 0x400   :  { %1070 = vmatmul.mubr.bf16.vlgmr.msra.gmra.mrb[8].mxu0 %v635_v51 }
 0x4d3   :  { %v741_v55 = vpop.f32.mrb[8].mxu0 }
 0x4d4   :  { %v742_v56 = vadd.f32 %v930_v54, %v741_v55  ;;  %v1071_v57 = vpop.f32.mrb[9].mxu0 }
 0x4d5   :  { %v744_v58 = vpop.f32.mrb[10].mxu0 }
 0x4d6   :  { %v745_v59 = vadd.f32 %v930_v54, %v744_v58  ;;  %v1072_v60 = vpop.f32.mrb[11].mxu0  ;;  %v748_v61 = vmax.f32 %v742_v56, 0.0 }
 0x4d8   :  { %v749_v62 = vmax.f32 %v745_v59, 0.0 }
 0x4da   :  { %v750_v63 = vpack.c.bf16 %v749_v62, %v748_v61 }
 0x4dc   :  { %1090 = vmatmul.mubr.bf16.vlgmr.msra.gmra.mrb[8].mxu1 %v750_v63 }
 0x5af   :  { %v856_v1 = vpop.f32.mrb[8].mxu1 }
 0x5b0   :  { %v857_v2 = vadd.f32 %v939_v0, %v856_v1  ;;  %v1091_v3 = vpop.f32.mrb[9].mxu1 }
 0x5b1   :  { %v859_v4 = vpop.f32.mrb[10].mxu1 }
 0x5b2   :  { %863 = vst [vmem:[%s1605_s2] sm:$0xff] %v857_v2  ;;  %v860_v5 = vadd.f32 %v939_v0, %v859_v4  ;;  %v1092_v6 = vpop.f32.mrb[11].mxu1 }
 0x5b4   :  { %864 = vst [vmem:[%s1605_s2 + $0x8] sm:$0xff] %v860_v5 }
 0x5b5   :  { %883 = vsyncpa [#allocation3], 1 }
 0x5b6   :  { %884 = vsyncpa [#allocation5], 1 }
 0x5b7   :  { %885 = vsyncpa [#allocation8], 1 }

</bundles_post_ra>
